<compile_context>
chip_gen: v5e
topology: v5e:2x2
jax: 0.10.0
libtpu: 0.0.40
codegen_flags: <defaults>
</compile_context>

<pallas_src>
import jax
import jax.numpy as jnp
from jax import lax
from jax.experimental import pallas as pl
from jax.experimental.pallas import tpu as pltpu

# ---- static config: Shrink(kernel_size=3, stride=1, padding=1,
#                            n_input_channels=3, n_output_channels=COUT, img_size=16)
IMG = 16
CIN = 3
COUT = 128          # demo width; the module default 768 (=6*128) also works: the
                    # (32, 768) bf16 weight stays resident (~48 KiB) and the
                    # output store stays lane-dense.
KSIZE = 3
STRIDE = 1
PAD = 1
POOL_K = 3
POOL_S = 2
POOL_P = 1

H_CONV = (IMG + 2 * PAD - KSIZE) // STRIDE + 1            # 16
W_CONV = H_CONV
H_POOL = (H_CONV + 2 * POOL_P - POOL_K) // POOL_S + 1     # 8
W_POOL = H_POOL
NCONV = H_CONV * W_CONV                                   # 256
SEQ_OUT = H_POOL * W_POOL                                 # 64
KDIM = KSIZE * KSIZE * CIN                                # 27
KPAD = 32                                                 # K padded 27 -> 32 (lane/sublane friendly)

# Batch-block tunables.
BB_MIN = 4          # >= 4 images/step amortizes the ~0.35us/step pipeline cost
BB_MAX = 32         # per-step VMEM stays at a few MiB, well under v7x's 64 MiB
TARGET_STEPS = 8    # >= 4 grid steps per v7x TensorCore under ("parallel",)


def _pick_bb(batch):
    """Tunable batch block per grid step (see BB_MIN/BB_MAX/TARGET_STEPS)."""
    return int(min(BB_MAX, max(BB_MIN, batch // TARGET_STEPS)))


def _shrink_kernel(p_ref, w_ref, o_ref):
    # p_ref: (BB, NCONV, KPAD)   bf16 im2col patches.  Row order within an
    #        image is (h, w_parity, wo), i.e. row = h*16 + wp*8 + wo with
    #        conv column w = 2*wo + wp (set up by the wrapper) so the pooling
    #        even/odd splits below land on non-minor axes.
    # w_ref: (KPAD, COUT)        bf16 conv weight as matmul RHS (grid-resident)
    # o_ref: (BB, SEQ_OUT, COUT) bf16 pooled tokens, token index = ho*W_POOL + wo
    bb = p_ref.shape[0]

    # Conv + ReLU as a single MXU matmul over the whole batch block (f32 acc).
    p = p_ref[...].reshape(bb * NCONV, KPAD)
    conv = jnp.dot(p, w_ref[...], preferred_element_type=jnp.float32)
    conv = jnp.maximum(conv, 0.0)
    # NOTE: ReLU guarantees conv >= 0, which is what makes 0 a valid neutral
    # element for the MaxPool border padding below.  Changing/removing the
    # activation would silently break the pooling padding semantics.

    # ---- MaxPool2d(kernel=3, stride=2, pad=1), entirely in registers.
    # Pooling math stays f32 (v5e has no bf16 VALU); cast only at the store.
    # row = ((ho*2 + hr)*2 + wp)*W_POOL + wo  with  h = 2*ho + hr, w = 2*wo + wp
    c = conv.reshape(bb, H_POOL, 2, 2, W_POOL, COUT)

    # H direction: output row ho = max over conv rows {2ho-1, 2ho, 2ho+1}.
    h_even = c[:, :, 0]                                    # h = 2*ho     (bb,HP,2,WP,C)
    h_odd = c[:, :, 1]                                     # h = 2*ho + 1
    hmax = jnp.maximum(h_even, h_odd)
    hmax = jnp.concatenate(
        [hmax[:, :1],                                      # ho=0: h=-1 tap is pad (=0)
         jnp.maximum(hmax[:, 1:], h_odd[:, :H_POOL - 1])], # h = 2*ho - 1
        axis=1)                                            # (bb, HP, 2, WP, C)

    # W direction: output col wo = max over conv cols {2wo-1, 2wo, 2wo+1}.
    w_even = hmax[:, :, 0]                                 # w = 2*wo     (bb,HP,WP,C)
    w_odd = hmax[:, :, 1]                                  # w = 2*wo + 1
    wmax = jnp.maximum(w_even, w_odd)
    pooled = jnp.concatenate(
        [wmax[:, :, :1],                                   # wo=0: w=-1 tap is pad (=0)
         jnp.maximum(wmax[:, :, 1:], w_odd[:, :, :W_POOL - 1])],  # w = 2*wo - 1
        axis=2)                                            # (bb, HP, WP, C)

    o_ref[...] = pooled.reshape(bb, SEQ_OUT, COUT).astype(o_ref.dtype)


@jax.jit
def shrink_forward(x, weight):
    # x:      (B, IMG*IMG, CIN)        -- Shrink.forward input
    # weight: (COUT, CIN, K, K)        -- PyTorch Conv2d weight layout (OIHW)
    B = x.shape[0]
    BB = _pick_bb(B)

    # The module's transpose(-2,-1) -> unflatten -> NCHW -> NHWC chain is an
    # identity on this layout: a single reshape gives NHWC directly.
    xb = x.astype(jnp.bfloat16).reshape(B, IMG, IMG, CIN)
    xp = jnp.pad(xb, ((0, 0), (PAD, PAD), (PAD, PAD), (0, 0)))

    # im2col patches, built bf16 in one materialization with the 27->32 K pad
    # folded into the same concatenate.  Feature index = (kh*K + kw)*CIN + ci.
    slabs = [xp[:, i:i + H_CONV * STRIDE:STRIDE, j:j + W_CONV * STRIDE:STRIDE, :]
             for i in range(KSIZE) for j in range(KSIZE)]
    slabs.append(jnp.zeros((B, H_CONV, W_CONV, KPAD - KDIM), jnp.bfloat16))
    patches = jnp.concatenate(slabs, axis=-1)              # (B, Hc, Wc, KPAD)
    # Re-order conv columns to (w_parity, wo) so in-kernel pooling splits stay
    # on non-minor axes (layout plumbing only; fused by XLA).
    patches = patches.reshape(B, H_CONV, W_POOL, POOL_S, KPAD)
    patches = jnp.transpose(patches, (0, 1, 3, 2, 4))      # (B, Hc, 2, WP, KPAD)
    patches = patches.reshape(B, NCONV, KPAD)              # row = h*16 + wp*8 + wo

    # Conv weight (OIHW) -> matmul RHS (KPAD, COUT), bf16, resident across grid.
    w_mat = jnp.transpose(weight, (2, 3, 1, 0)).reshape(KDIM, COUT)
    w_mat = jnp.pad(w_mat, ((0, KPAD - KDIM), (0, 0))).astype(jnp.bfloat16)

    # Pad batch to a multiple of the batch block.
    bp = pl.cdiv(B, BB) * BB
    if bp != B:
        patches = jnp.pad(patches, ((0, bp - B), (0, 0), (0, 0)))

    out = pl.pallas_call(
        _shrink_kernel,
        out_shape=jax.ShapeDtypeStruct((bp, SEQ_OUT, COUT), jnp.bfloat16),
        grid=(bp // BB,),
        in_specs=[
            pl.BlockSpec((BB, NCONV, KPAD), lambda b: (b, 0, 0)),
            pl.BlockSpec((KPAD, COUT), lambda b: (0, 0)),      # resident weight
        ],
        out_specs=pl.BlockSpec((BB, SEQ_OUT, COUT), lambda b: (b, 0, 0)),
        compiler_params=pltpu.CompilerParams(
            dimension_semantics=("parallel",)),
    )(patches, w_mat)
    return out[:B]


def reference(x, weight):
    # pure-JAX reference mirroring the PyTorch module exactly (f32)
    B = x.shape[0]
    img = jnp.transpose(x, (0, 2, 1)).reshape(B, CIN, IMG, IMG)
    conv = lax.conv_general_dilated(
        img.astype(jnp.float32), weight.astype(jnp.float32),
        window_strides=(STRIDE, STRIDE),
        padding=[(PAD, PAD), (PAD, PAD)],
        dimension_numbers=("NCHW", "OIHW", "NCHW"))
    act = jnp.maximum(conv, 0.0)
    pooled = lax.reduce_window(
        act, -jnp.inf, lax.max,
        (1, 1, POOL_K, POOL_K), (1, 1, POOL_S, POOL_S),
        [(0, 0), (0, 0), (POOL_P, POOL_P), (POOL_P, POOL_P)])
    return jnp.transpose(pooled.reshape(B, COUT, SEQ_OUT), (0, 2, 1))


if __name__ == "__main__":
    key = jax.random.PRNGKey(0)
    kx, kw = jax.random.split(key)
    B = 32   # -> BB=4, 8 grid steps (>= 4 per v7x TensorCore)
    x = jax.random.normal(kx, (B, IMG * IMG, CIN), dtype=jnp.float32)
    # deterministic Kaiming-normal init: std = sqrt(2 / fan_in), fan_in = Cin*K*K
    fan_in = CIN * KSIZE * KSIZE
    weight = jax.random.normal(kw, (COUT, CIN, KSIZE, KSIZE),
                               dtype=jnp.float32) * jnp.sqrt(2.0 / fan_in)

    out = jax.block_until_ready(shrink_forward(x, weight))
    ref = reference(x, weight)
    assert out.shape == (B, SEQ_OUT, COUT), out.shape
    assert out.dtype == jnp.bfloat16, out.dtype
    out_f32 = out.astype(jnp.float32)
    max_err = float(jnp.max(jnp.abs(out_f32 - ref)))
    # bf16 matmul operands + bf16 output vs f32 reference -> small numerical delta
    assert jnp.allclose(out_f32, ref, rtol=3e-2, atol=3e-2), max_err
    print("KERNEL_OK")
</pallas_src>

<mosaic_0001>
module attributes {stable_mosaic.version = 11 : i64} {
  func.func @_shrink_kernel(%arg0: i32, %arg1: memref<4x256x32xbf16, #tpu.memory_space<vmem>>, %arg2: memref<32x128xbf16, #tpu.memory_space<vmem>>, %arg3: memref<4x64x128xbf16, #tpu.memory_space<vmem>>) attributes {dimension_semantics = [#tpu.dimension_semantics<parallel>], iteration_bounds = array<i64: 8>, scalar_prefetch = 0 : i64, scratch_operands = 0 : i64, tpu.core_type = #tpu.core_type<tc>, window_params = [{transform_indices = @transform_0, window_bounds = array<i64: 4, 256, 32>}, {pipeline_mode = #tpu.pipeline_mode<synchronous>, transform_indices = @transform_1, window_bounds = array<i64: 32, 128>}, {transform_indices = @transform_2, window_bounds = array<i64: 4, 64, 128>}]} {
    %c0 = arith.constant 0 : index
    %c0_0 = arith.constant 0 : index
    %c0_1 = arith.constant 0 : index
    %0 = vector.load %arg1[%c0, %c0_0, %c0_1] : memref<4x256x32xbf16, #tpu.memory_space<vmem>>, vector<4x256x32xbf16>
    %1 = vector.shape_cast %0 : vector<4x256x32xbf16> to vector<1024x32xbf16>
    %c0_2 = arith.constant 0 : index
    %c0_3 = arith.constant 0 : index
    %2 = vector.load %arg2[%c0_2, %c0_3] : memref<32x128xbf16, #tpu.memory_space<vmem>>, vector<32x128xbf16>
    %cst = arith.constant dense<0.000000e+00> : vector<1024x128xf32>
    %3 = tpu.matmul %1, %2, %cst {dimension_numbers = #tpu.dot_dimension_numbers<[1], [0], [0], [1], [0, 0, 1, 1], [], []>} : vector<1024x32xbf16>, vector<32x128xbf16>, vector<1024x128xf32> -> vector<1024x128xf32>
    %cst_4 = arith.constant 0.000000e+00 : f32
    %4 = vector.broadcast %cst_4 : f32 to vector<1024x128xf32>
    %5 = arith.maximumf %3, %4 : vector<1024x128xf32>
    %6 = vector.shape_cast %5 : vector<1024x128xf32> to vector<4x8x2x2x8x128xf32>
    %7 = vector.extract_strided_slice %6 {offsets = [0, 0, 0, 0, 0, 0], sizes = [4, 8, 1, 2, 8, 128], strides = [1, 1, 1, 1, 1, 1]} : vector<4x8x2x2x8x128xf32> to vector<4x8x1x2x8x128xf32>
    %8 = vector.shape_cast %7 : vector<4x8x1x2x8x128xf32> to vector<4x8x2x8x128xf32>
    %9 = vector.extract_strided_slice %6 {offsets = [0, 0, 1, 0, 0, 0], sizes = [4, 8, 1, 2, 8, 128], strides = [1, 1, 1, 1, 1, 1]} : vector<4x8x2x2x8x128xf32> to vector<4x8x1x2x8x128xf32>
    %10 = vector.shape_cast %9 : vector<4x8x1x2x8x128xf32> to vector<4x8x2x8x128xf32>
    %11 = arith.maximumf %8, %10 : vector<4x8x2x8x128xf32>
    %12 = vector.extract_strided_slice %11 {offsets = [0, 0, 0, 0, 0], sizes = [4, 1, 2, 8, 128], strides = [1, 1, 1, 1, 1]} : vector<4x8x2x8x128xf32> to vector<4x1x2x8x128xf32>
    %13 = vector.extract_strided_slice %11 {offsets = [0, 1, 0, 0, 0], sizes = [4, 7, 2, 8, 128], strides = [1, 1, 1, 1, 1]} : vector<4x8x2x8x128xf32> to vector<4x7x2x8x128xf32>
    %14 = vector.extract_strided_slice %10 {offsets = [0, 0, 0, 0, 0], sizes = [4, 7, 2, 8, 128], strides = [1, 1, 1, 1, 1]} : vector<4x8x2x8x128xf32> to vector<4x7x2x8x128xf32>
    %15 = arith.maximumf %13, %14 : vector<4x7x2x8x128xf32>
    %16 = tpu.concatenate %12, %15 in 1 : vector<4x1x2x8x128xf32>, vector<4x7x2x8x128xf32> -> vector<4x8x2x8x128xf32>
    %17 = vector.extract_strided_slice %16 {offsets = [0, 0, 0, 0, 0], sizes = [4, 8, 1, 8, 128], strides = [1, 1, 1, 1, 1]} : vector<4x8x2x8x128xf32> to vector<4x8x1x8x128xf32>
    %18 = vector.shape_cast %17 : vector<4x8x1x8x128xf32> to vector<4x8x8x128xf32>
    %19 = vector.extract_strided_slice %16 {offsets = [0, 0, 1, 0, 0], sizes = [4, 8, 1, 8, 128], strides = [1, 1, 1, 1, 1]} : vector<4x8x2x8x128xf32> to vector<4x8x1x8x128xf32>
    %20 = vector.shape_cast %19 : vector<4x8x1x8x128xf32> to vector<4x8x8x128xf32>
    %21 = arith.maximumf %18, %20 : vector<4x8x8x128xf32>
    %22 = vector.extract_strided_slice %21 {offsets = [0, 0, 0, 0], sizes = [4, 8, 1, 128], strides = [1, 1, 1, 1]} : vector<4x8x8x128xf32> to vector<4x8x1x128xf32>
    %23 = vector.extract_strided_slice %21 {offsets = [0, 0, 1, 0], sizes = [4, 8, 7, 128], strides = [1, 1, 1, 1]} : vector<4x8x8x128xf32> to vector<4x8x7x128xf32>
    %24 = vector.extract_strided_slice %20 {offsets = [0, 0, 0, 0], sizes = [4, 8, 7, 128], strides = [1, 1, 1, 1]} : vector<4x8x8x128xf32> to vector<4x8x7x128xf32>
    %25 = arith.maximumf %23, %24 : vector<4x8x7x128xf32>
    %26 = tpu.concatenate %22, %25 in 2 : vector<4x8x1x128xf32>, vector<4x8x7x128xf32> -> vector<4x8x8x128xf32>
    %27 = vector.shape_cast %26 : vector<4x8x8x128xf32> to vector<4x64x128xf32>
    %28 = arith.truncf %27 : vector<4x64x128xf32> to vector<4x64x128xbf16>
    %c0_5 = arith.constant 0 : index
    %c0_6 = arith.constant 0 : index
    %c0_7 = arith.constant 0 : index
    %29 = vector.load %arg3[%c0_5, %c0_6, %c0_7] : memref<4x64x128xbf16, #tpu.memory_space<vmem>>, vector<4x64x128xbf16>
    tpu.vector_store %arg3[%c0_5, %c0_6, %c0_7], %28 {strides = array<i32>} : memref<4x64x128xbf16, #tpu.memory_space<vmem>>, vector<4x64x128xbf16>,
    return
  }
  func.func @transform_0(%arg0: i32) -> (i32, i32, i32) {
    %c0_i32 = arith.constant 0 : i32
    %c0_i32_0 = arith.constant 0 : i32
    %c0_i32_1 = arith.constant 0 : i32
    return %arg0, %c0_i32, %c0_i32_0 : i32, i32, i32
  }
  func.func @transform_1(%arg0: i32) -> (i32, i32) {
    %c0_i32 = arith.constant 0 : i32
    %c0_i32_0 = arith.constant 0 : i32
    %c0_i32_1 = arith.constant 0 : i32
    return %c0_i32, %c0_i32_0 : i32, i32
  }
  func.func @transform_2(%arg0: i32) -> (i32, i32, i32) {
    %c0_i32 = arith.constant 0 : i32
    %c0_i32_0 = arith.constant 0 : i32
    %c0_i32_1 = arith.constant 0 : i32
    return %arg0, %c0_i32, %c0_i32_0 : i32, i32, i32
  }
}

</mosaic_0001>

<bundles_post_ra>
// kernel: shrink_forward.1
= control target key start
LH: loop header
LB: loop body
LE: loop exit
PB: predicated region body
PF: predicated region fallthrough
CT: control target
= control target key end

     0   :  { %7 = vsyncpa [#allocation3], 0  ;;  %s3081_s0 = inlined_call_operand.vmem [shape: bf16[32,256,32], index: 0, kind: input, shape index: {}]   ;;  %s3082_s1 = inlined_call_operand.vmem [shape: bf16[32,128], index: 1, kind: input, shape index: {}]   ;;  %s3083_s2 = inlined_call_operand.hbm [shape: bf16[32,64,128], index: 2, kind: output, shape index: {}]  }
   0x1   :  { %9 = vsyncpa [#allocation3 + $0x1], 0  ;;  %s2353_s9 = smov 0   ;;  %s2355_s10 = smov 0  }
   0x2   :  { %s2357_s11 = smov 0   ;;  %s2359_s12 = smov 0  }
   0x3 LB: > { %s2374_s13 = sadd.s32 4294967295, %s2334_s12   ;;  %s1719_s14 = sadd.s32 4294967294, %s2334_s12   ;;  %s2334_s12 = sphi %s2359_s12, %s3089_s12   ;;  %s2330_s11 = sphi %s2357_s11, %s3088_s11   ;;  %s2326_s10 = sphi %s2355_s10, %s3087_s10   ;;  %s2322_s9 = sphi %s2353_s9, %s3086_s9  }
   0x4   : > { %s2378_s15 = sadd.s32 1, %s2334_s12   ;;  %s69_s16 = sadd.s32 1, %s2330_s11 }
   0x5   : > { %s66_s17 = ssub.s32 %s2334_s12, %s2378_s15  ;;  %p79_p0 = scmp.ne.s32.totalorder %s2330_s11, %s2326_s10 }
   0x6   : > { %p67_p1 = scmp.eq.s32.totalorder %s66_s17, 0  ;;  %p80_p2 = scmp.eq.s32.totalorder %s2374_s13, 7 }
   0x7   : > { %p85_p3 = scmp.ne.s32.totalorder %s2326_s10, %s2322_s9  ;;  %p86_p4 = scmp.eq.s32.totalorder %s1719_s14, 7 }
   0x8   : > { %s2389_s18 = scalar_select %p67_p1, %s2330_s11, %s69_s16  }
   0x9   : > { %p2391_p5 = por %p80_p2, %p79_p0  ;;  %p2395_p6 = por %p86_p4, %p85_p3 }
   0xa   : > { %p1722_p7 = scmp.ge.s32.totalorder %s2334_s12, 1  ;;  %p117_p8 = scmp.lt.s32.totalorder %s2334_s12, 9 }
   0xc   : > { %p118_p9 = pnand %p1722_p7, %p117_p8 }
   0xd   : > { %s1724_s23 = sshll.u32 (!%p118_p9), %s2374_s13, 2  ;;  %s137_s30 = sand.u32 (!%p118_p9), 1, %s2326_s10  }
   0xe   : > { %121 = sbr.rel (%p118_p9) target bundleno = 426 (0x1aa), region = 28  ;;  %p141_p10 = scmp.lt.s32.totalorder (!%p118_p9), %s1724_s23, 31 }
   0xf   : > { %s1723_s3 = sshll.u32 (!%p118_p9), %s137_s30, 7  ;;  %s2129_s5 = sshll.u32 (!%p118_p9), %s2374_s13, 7 }
  0x10   : > { %s2643_s4 = scalar_lea.vmem (!%p118_p9), [#allocation2], %s1723_s3  ;;  %s1653_s8 = scalar_lea.hbm (!%p118_p9), %s3083_s2, %s2129_s5 }
  0x11   : > { %s1654_s13 = sshll.u32 (!%p118_p9), %s2643_s4, 4  ;;  %s1656_s14 = sshll.u32 (!%p118_p9), %s1653_s8, 4  ;;  %s1655_s13 = int_to_ptr.vmem [resolvable:$true] %s1654_s13  ;;  %s1657_s14 = int_to_ptr.hbm [resolvable:$true] %s1656_s14 }
  0x12   : > { %s1641_s16 = scalar_lea.sflag (!%p118_p9), [#allocation3], %s137_s30  ;;  %s2286_s17 = sshra.s32 (!%p118_p9), %s1657_s14, 4  ;;  %s2287_s17 = int_to_ptr.hbm [resolvable:$true] %s2286_s17 }
  0x13   : > { %v2127_v0 = vld [vmem:[%s3082_s1 + $0x8] sm:$0xff]  ;;  %v2126_v1 = vld [vmem:[%s3082_s1] sm:$0xff]  ;;  %s3091_s23 = smov (!%p141_p10, %s1724_s23), 31  ;;  %vm613_vm0 = vcmask 261120   ;;  %vm1543_vm1 = vcmask 1040384   ;;  %s2288_s21 = scalar_lea.hbm %s2287_s17, 128 }
  0x14   : > { %812 = vmatpush.bf16.msra.mxu0 %v2127_v0  ;;  %2225 = vmatpush.bf16.msra.mxu1 %v2127_v0  ;;  %s2061_s26 = sshll.u32 %s3091_s23, 7  ;;  %p2289_p11 = scmp.ne.s32.totalorder %s2287_s17, %s2288_s21 }
  0x15   : > { %2226 = vmatpush.bf16.msra.mxu2 %v2127_v0  ;;  %2227 = vmatpush.bf16.msra.mxu3 %v2127_v0  ;;  %s2411_s29 = scalar_lea.vmem %s3081_s0, %s2061_s26  ;;  %s2292_s24 = scalar_lea.hbm %s3083_s2, 1024 }
  0x16   : > { %v2062_v2 = vld [vmem:[%s2411_s29] sm:$0xff]  ;;  %v2063_v6 = vld [vmem:[%s2411_s29 + $0x8] sm:$0xff]  ;;  %v2064_v10 = vld [vmem:[%s2411_s29 + $0x10] sm:$0xff]  ;;  %p2290_p12 = pnand %p2289_p11, %p2391_p5  ;;  %p2293_p0 = scmp.lt.s32.totalorder %s2287_s17, %s3083_s2 }
  0x17   : > { %v2078_v3 = vld [vmem:[%s2411_s29 + $0x80] sm:$0xff]  ;;  %v2079_v7 = vld [vmem:[%s2411_s29 + $0x88] sm:$0xff]  ;;  %v2080_v11 = vld [vmem:[%s2411_s29 + $0x90] sm:$0xff]  ;;  %p2294_p1 = scmp.lt.s32.totalorder %s2292_s24, %s2288_s21 }
  0x18   : > { %813 = vmatpush.bf16.msra.mxu0 %v2126_v1  ;;  %2228 = vmatpush.bf16.msra.mxu1 %v2126_v1  ;;  %v2094_v4 = vld [vmem:[%s2411_s29 + $0x100] sm:$0xff]  ;;  %v2095_v8 = vld [vmem:[%s2411_s29 + $0x108] sm:$0xff]  ;;  %v2096_v12 = vld [vmem:[%s2411_s29 + $0x110] sm:$0xff]  ;;  %p2291_p13 = pneg %p2290_p12 }
  0x19   : > { %2229 = vmatpush.bf16.msra.mxu2 %v2126_v1  ;;  %2230 = vmatpush.bf16.msra.mxu3 %v2126_v1  ;;  %v2110_v5 = vld [vmem:[%s2411_s29 + $0x180] sm:$0xff]  ;;  %v2111_v9 = vld [vmem:[%s2411_s29 + $0x188] sm:$0xff]  ;;  %v2112_v13 = vld [vmem:[%s2411_s29 + $0x190] sm:$0xff]  ;;  %p2295_p2 = por %p2294_p1, %p2293_p0 }
  0x1a   : > { %v2065_v14 = vld [vmem:[%s2411_s29 + $0x18] sm:$0xff]  ;;  %v2066_v18 = vld [vmem:[%s2411_s29 + $0x20] sm:$0xff]  ;;  %v2067_v22 = vld [vmem:[%s2411_s29 + $0x28] sm:$0xff] }
  0x1b   : > { %1991 = vmatmul.msk.bf16.vlgmr.msra.gmra.mxu0 %vm613_vm0, %v2062_v2  ;;  %2007 = vmatmul.msk.bf16.vlgmr.msra.gmra.mxu1 %vm613_vm0, %v2078_v3  ;;  %v2081_v15 = vld [vmem:[%s2411_s29 + $0x98] sm:$0xff]  ;;  %v2082_v19 = vld [vmem:[%s2411_s29 + $0xa0] sm:$0xff]  ;;  %v2083_v23 = vld [vmem:[%s2411_s29 + $0xa8] sm:$0xff]  ;;  %p2296_p3 = pnand %p2295_p2, %p2291_p13 }
  0x1c   : > { %2023 = vmatmul.msk.bf16.vlgmr.msra.gmra.mxu2 %vm613_vm0, %v2094_v4  ;;  %2039 = vmatmul.msk.bf16.vlgmr.msra.gmra.mxu3 %vm613_vm0, %v2110_v5  ;;  %v2097_v16 = vld [vmem:[%s2411_s29 + $0x118] sm:$0xff]  ;;  %v2098_v20 = vld [vmem:[%s2411_s29 + $0x120] sm:$0xff]  ;;  %v2099_v24 = vld [vmem:[%s2411_s29 + $0x128] sm:$0xff] }
  0x1d   : > { %v2113_v17 = vld [vmem:[%s2411_s29 + $0x198] sm:$0xff]  ;;  %v2114_v21 = vld [vmem:[%s2411_s29 + $0x1a0] sm:$0xff]  ;;  %v2115_v25 = vld [vmem:[%s2411_s29 + $0x1a8] sm:$0xff] }
  0x1e   : > { %v2068_v26 = vld [vmem:[%s2411_s29 + $0x30] sm:$0xff]  ;;  %v2069_v30 = vld [vmem:[%s2411_s29 + $0x38] sm:$0xff]  ;;  %v2070_v34 = vld [vmem:[%s2411_s29 + $0x40] sm:$0xff] }
  0x1f   : > { %v2084_v27 = vld [vmem:[%s2411_s29 + $0xb0] sm:$0xff]  ;;  %v2085_v31 = vld [vmem:[%s2411_s29 + $0xb8] sm:$0xff]  ;;  %v2086_v35 = vld [vmem:[%s2411_s29 + $0xc0] sm:$0xff] }
  0x20   : > { %v2100_v28 = vld [vmem:[%s2411_s29 + $0x130] sm:$0xff]  ;;  %v2101_v32 = vld [vmem:[%s2411_s29 + $0x138] sm:$0xff]  ;;  %v2102_v38 = vld [vmem:[%s2411_s29 + $0x140] sm:$0xff] }
  0x21   : > { %v2116_v29 = vld [vmem:[%s2411_s29 + $0x1b0] sm:$0xff]  ;;  %v2117_v33 = vld [vmem:[%s2411_s29 + $0x1b8] sm:$0xff]  ;;  %v2118_v39 = vld [vmem:[%s2411_s29 + $0x1c0] sm:$0xff] }
  0x22   : > { %v2071_v46 = vld [vmem:[%s2411_s29 + $0x48] sm:$0xff]  ;;  %v2072_v58 = vld [vmem:[%s2411_s29 + $0x50] sm:$0xff] }
  0x23   : > { %v2087_v47 = vld [vmem:[%s2411_s29 + $0xc8] sm:$0xff]  ;;  %v2088_v59 = vld [vmem:[%s2411_s29 + $0xd0] sm:$0xff] }
  0x24   : > { %v2103_v50 = vld [vmem:[%s2411_s29 + $0x148] sm:$0xff]  ;;  %v2104_v62 = vld [vmem:[%s2411_s29 + $0x150] sm:$0xff] }
  0x25   : > { %v2119_v51 = vld [vmem:[%s2411_s29 + $0x1c8] sm:$0xff]  ;;  %v2120_v63 = vld [vmem:[%s2411_s29 + $0x1d0] sm:$0xff] }
  0x2b   : > { %1992 = vmatmul.msk.bf16.gmra.mxu0 %vm613_vm0, %v2063_v6  ;;  %2008 = vmatmul.msk.bf16.gmra.mxu1 %vm613_vm0, %v2079_v7 }
  0x2c   : > { %2024 = vmatmul.msk.bf16.gmra.mxu2 %vm613_vm0, %v2095_v8  ;;  %2040 = vmatmul.msk.bf16.gmra.mxu3 %vm613_vm0, %v2111_v9 }
  0x3b   : > { %1993 = vmatmul.msk.bf16.gmra.mxu0 %vm613_vm0, %v2064_v10  ;;  %2009 = vmatmul.msk.bf16.gmra.mxu1 %vm613_vm0, %v2080_v11  ;;  %v2073_v10 = vld [vmem:[%s2411_s29 + $0x58] sm:$0xff] }
  0x3c   : > { %2025 = vmatmul.msk.bf16.gmra.mxu2 %vm613_vm0, %v2096_v12  ;;  %2041 = vmatmul.msk.bf16.gmra.mxu3 %vm613_vm0, %v2112_v13  ;;  %v2089_v11 = vld [vmem:[%s2411_s29 + $0xd8] sm:$0xff] }
  0x4b   : > { %1994 = vmatmul.msk.bf16.gmra.mxu0 %vm613_vm0, %v2065_v14  ;;  %2010 = vmatmul.msk.bf16.gmra.mxu1 %vm613_vm0, %v2081_v15 }
  0x4c   : > { %2026 = vmatmul.msk.bf16.gmra.mxu2 %vm613_vm0, %v2097_v16  ;;  %2042 = vmatmul.msk.bf16.gmra.mxu3 %vm613_vm0, %v2113_v17  ;;  %v2105_v16 = vld [vmem:[%s2411_s29 + $0x158] sm:$0xff] }
  0x4d   : > { %v2121_v17 = vld [vmem:[%s2411_s29 + $0x1d8] sm:$0xff] }
  0x5b   : > { %1995 = vmatmul.msk.bf16.gmra.mxu0 %vm613_vm0, %v2066_v18  ;;  %2011 = vmatmul.msk.bf16.gmra.mxu1 %vm613_vm0, %v2082_v19 }
  0x5c   : > { %2027 = vmatmul.msk.bf16.gmra.mxu2 %vm613_vm0, %v2098_v20  ;;  %2043 = vmatmul.msk.bf16.gmra.mxu3 %vm613_vm0, %v2114_v21 }
  0x6b   : > { %1996 = vmatmul.msk.bf16.gmra.mxu0 %vm613_vm0, %v2067_v22  ;;  %2012 = vmatmul.msk.bf16.gmra.mxu1 %vm613_vm0, %v2083_v23 }
  0x6c   : > { %2028 = vmatmul.msk.bf16.gmra.mxu2 %vm613_vm0, %v2099_v24  ;;  %2044 = vmatmul.msk.bf16.gmra.mxu3 %vm613_vm0, %v2115_v25 }
  0x7b   : > { %1997 = vmatmul.msk.bf16.gmra.mxu0 %vm613_vm0, %v2068_v26  ;;  %2013 = vmatmul.msk.bf16.gmra.mxu1 %vm613_vm0, %v2084_v27 }
  0x7c   : > { %2029 = vmatmul.msk.bf16.gmra.mxu2 %vm613_vm0, %v2100_v28  ;;  %2045 = vmatmul.msk.bf16.gmra.mxu3 %vm613_vm0, %v2116_v29 }
  0x8b   : > { %1998 = vmatmul.msk.bf16.gmra.mxu0 %vm613_vm0, %v2069_v30  ;;  %2014 = vmatmul.msk.bf16.gmra.mxu1 %vm613_vm0, %v2085_v31 }
  0x8c   : > { %2030 = vmatmul.msk.bf16.gmra.mxu2 %vm613_vm0, %v2101_v32  ;;  %2046 = vmatmul.msk.bf16.gmra.mxu3 %vm613_vm0, %v2117_v33 }
  0x98   : > { %v815_v36 = vpop.f32.mrf.mxu0  ;;  %v2479_v37 = vpop.f32.mrf.mxu1 }
  0x99   : > { %v1135_v12 = vmax.f32 %v815_v36, 0.0  ;;  %v1167_v21 = vmax.f32 %v2479_v37, 0.0 }
  0x9b   : > { %1999 = vmatmul.msk.bf16.gmra.mxu0 %vm613_vm0, %v2070_v34  ;;  %2015 = vmatmul.msk.bf16.gmra.mxu1 %vm613_vm0, %v2086_v35 }
  0x9c   : > { %2031 = vmatmul.msk.bf16.gmra.mxu2 %vm613_vm0, %v2102_v38  ;;  %2047 = vmatmul.msk.bf16.gmra.mxu3 %vm613_vm0, %v2118_v39 }
  0x9f   : > { %v2487_v40 = vpop.f32.mrf.mxu2  ;;  %v2489_v41 = vpop.f32.mrf.mxu3 }
  0xa0   : > { %v817_v42 = vpop.f32.mrf.mxu0  ;;  %v897_v43 = vpop.f32.mrf.mxu1  ;;  %v1199_v23 = vmax.f32 %v2487_v40, 0.0  ;;  %v1231_v24 = vmax.f32 %v2489_v41, 0.0 }
  0xa1   : > { %v1136_v5 = vmax.f32 %v817_v42, 0.0  ;;  %v1168_v18 = vmax.f32 %v897_v43, 0.0 }
  0xa7   : > { %v2491_v44 = vpop.f32.mrf.mxu2  ;;  %v2493_v45 = vpop.f32.mrf.mxu3 }
  0xa8   : > { %v2497_v48 = vpop.f32.mrf.mxu0  ;;  %v2499_v49 = vpop.f32.mrf.mxu1  ;;  %v1200_v27 = vmax.f32 %v2491_v44, 0.0  ;;  %v1232_v31 = vmax.f32 %v2493_v45, 0.0 }
  0xa9   : > { %v1137_v6 = vmax.f32 %v2497_v48, 0.0  ;;  %v1169_v19 = vmax.f32 %v2499_v49, 0.0 }
  0xab   : > { %2000 = vmatmul.msk.bf16.gmra.mxu0 %vm613_vm0, %v2071_v46  ;;  %2016 = vmatmul.msk.bf16.gmra.mxu1 %vm613_vm0, %v2087_v47  ;;  %v1263_v20 = vmax.f32 %v1135_v12, %v1137_v6  ;;  %v1279_v28 = vmax.f32 %v1167_v21, %v1169_v19 }
  0xac   : > { %2032 = vmatmul.msk.bf16.gmra.mxu2 %vm613_vm0, %v2103_v50  ;;  %2048 = vmatmul.msk.bf16.gmra.mxu3 %vm613_vm0, %v2119_v51 }
  0xaf   : > { %v2507_v52 = vpop.f32.mrf.mxu2  ;;  %v2509_v53 = vpop.f32.mrf.mxu3 }
  0xb0   : > { %v2511_v54 = vpop.f32.mrf.mxu0  ;;  %v2513_v55 = vpop.f32.mrf.mxu1  ;;  %v1201_v32 = vmax.f32 %v2507_v52, 0.0  ;;  %v1233_v33 = vmax.f32 %v2509_v53, 0.0 }
  0xb1   : > { %v1138_v4 = vmax.f32 %v2511_v54, 0.0  ;;  %v1170_v7 = vmax.f32 %v2513_v55, 0.0  ;;  %v2074_v55 = vld [vmem:[%s2411_s29 + $0x60] sm:$0xff] }
  0xb2   : > { %v1295_v51 = vmax.f32 %v1199_v23, %v1201_v32 }
  0xb3   : > { %v1264_v13 = vmax.f32 %v1136_v5, %v1138_v4  ;;  %v1280_v22 = vmax.f32 %v1168_v18, %v1170_v7 }
  0xb5   : > { %v1383_v25 = vmax.f32 %v1263_v20, %v1264_v13  ;;  %v1447_v26 = vrot.slane %v1264_v13, 7  ;;  %v1391_v35 = vmax.f32 %v1279_v28, %v1280_v22  ;;  %v1455_v36 = vrot.slane %v1280_v22, 7 }
  0xb7   : > { %v2515_v56 = vpop.f32.mrf.mxu2  ;;  %v2517_v57 = vpop.f32.mrf.mxu3  ;;  %v1511_v41 = vmax.f32 %v1383_v25, %v1447_v26 }
  0xb8   : > { %v825_v60 = vpop.f32.mrf.mxu0  ;;  %v905_v61 = vpop.f32.mrf.mxu1  ;;  %v1202_v34 = vmax.f32 %v2515_v56, 0.0  ;;  %v1234_v42 = vmax.f32 %v2517_v57, 0.0 }
  0xb9   : > { %v1139_v37 = vmax.f32 %v825_v60, 0.0  ;;  %v1171_v38 = vmax.f32 %v905_v61, 0.0  ;;  %v1311_v61 = vmax.f32 %v1231_v24, %v1233_v33 }
  0xba   : > { %v1312_v5 = vmax.f32 %v1232_v31, %v1234_v42  ;;  %v2106_v31 = vld [vmem:[%s2411_s29 + $0x160] sm:$0xff] }
  0xbb   : > { %2001 = vmatmul.msk.bf16.gmra.mxu0 %vm613_vm0, %v2072_v58  ;;  %2017 = vmatmul.msk.bf16.gmra.mxu1 %vm613_vm0, %v2088_v59  ;;  %v1296_v58 = vmax.f32 %v1200_v27, %v1202_v34 }
  0xbc   : > { %2033 = vmatmul.msk.bf16.gmra.mxu2 %vm613_vm0, %v2104_v62  ;;  %2049 = vmatmul.msk.bf16.gmra.mxu3 %vm613_vm0, %v2120_v63  ;;  %v1519_v62 = vmax.f32 %v1391_v35, %v1455_v36  ;;  %v1407_v36 = vmax.f32 %v1311_v61, %v1312_v5 }
  0xbd   : > { %v1399_v18 = vmax.f32 %v1295_v51, %v1296_v58  ;;  %v1463_v20 = vrot.slane %v1296_v58, 7 }
  0xbf   : > { %v2527_v0 = vpop.f32.mrf.mxu2  ;;  %v2529_v1 = vpop.f32.mrf.mxu3  ;;  %v1527_v53 = vmax.f32 %v1399_v18, %v1463_v20 }
  0xc0   : > { %v827_v2 = vpop.f32.mrf.mxu0  ;;  %v907_v3 = vpop.f32.mrf.mxu1 }
  0xc1   : > { %v1140_v43 = vmax.f32 %v827_v2, 0.0  ;;  %v1172_v44 = vmax.f32 %v907_v3, 0.0  ;;  %v1544_v3 = vsel %vm1543_vm1, %v1383_v25, %v1511_v41 }
  0xc7   : > { %v2534_v8 = vpop.f32.mrf.mxu2  ;;  %v2536_v9 = vpop.f32.mrf.mxu3 }
  0xc8   : > { %v2542_v14 = vpop.f32.mrf.mxu0  ;;  %v2544_v15 = vpop.f32.mrf.mxu1  ;;  %v1236_v24 = vmax.f32 %v2536_v9, 0.0 }
  0xc9   : > { %v1141_v29 = vmax.f32 %v2542_v14, 0.0  ;;  %v1173_v30 = vmax.f32 %v2544_v15, 0.0 }
  0xcb   : > { %2002 = vmatmul.msk.bf16.gmra.mxu0 %vm613_vm0, %v2073_v10  ;;  %2018 = vmatmul.msk.bf16.gmra.mxu1 %vm613_vm0, %v2089_v11  ;;  %v1265_v47 = vmax.f32 %v1139_v37, %v1141_v29  ;;  %v1281_v48 = vmax.f32 %v1171_v38, %v1173_v30  ;;  %v1203_v10 = vmax.f32 %v2527_v0, 0.0  ;;  %v1235_v11 = vmax.f32 %v2529_v1, 0.0 }
  0xcc   : > { %2034 = vmatmul.msk.bf16.gmra.mxu2 %vm613_vm0, %v2105_v16  ;;  %2050 = vmatmul.msk.bf16.gmra.mxu3 %vm613_vm0, %v2121_v17  ;;  %v1471_v37 = vrot.slane %v1312_v5, 7 }
  0xcd   : > { %v1327_v12 = vmax.f32 %v1265_v47, %v1137_v6  ;;  %v1341_v13 = vmax.f32 %v1281_v48, %v1169_v19 }
  0xcf   : > { %v2565_v39 = vpop.f32.mrf.mxu2  ;;  %v2567_v40 = vpop.f32.mrf.mxu3 }
  0xd0   : > { %v2570_v45 = vpop.f32.mrf.mxu0  ;;  %v2572_v46 = vpop.f32.mrf.mxu1  ;;  %v1205_v59 = vmax.f32 %v2565_v39, 0.0  ;;  %v1237_v60 = vmax.f32 %v2567_v40, 0.0 }
  0xd1   : > { %v1142_v49 = vmax.f32 %v2570_v45, 0.0  ;;  %v1174_v50 = vmax.f32 %v2572_v46, 0.0  ;;  %v2092_v45 = vld [vmem:[%s2411_s29 + $0xf0] sm:$0xff] }
  0xd2   : > { %v1297_v21 = vmax.f32 %v1203_v10, %v1205_v59  ;;  %v1313_v0 = vmax.f32 %v1235_v11, %v1237_v60  ;;  %v1560_v11 = vsel %vm1543_vm1, %v1399_v18, %v1527_v53  ;;  %v2123_v18 = vld [vmem:[%s2411_s29 + $0x1e8] sm:$0xff] }
  0xd3   : > { %v1266_v63 = vmax.f32 %v1140_v43, %v1142_v49  ;;  %v1282_v2 = vmax.f32 %v1172_v44, %v1174_v50  ;;  %v2122_v43 = vld [vmem:[%s2411_s29 + $0x1e0] sm:$0xff] }
  0xd4   : > { %v1355_v9 = vmax.f32 %v1297_v21, %v1201_v32  ;;  %v1369_v48 = vmax.f32 %v1313_v0, %v1233_v33  ;;  %v1535_v33 = vmax.f32 %v1407_v36, %v1471_v37 }
  0xd5   : > { %v1328_v16 = vmax.f32 %v1266_v63, %v1138_v4  ;;  %v1342_v17 = vmax.f32 %v1282_v2, %v1170_v7  ;;  %v2090_v4 = vld [vmem:[%s2411_s29 + $0xe0] sm:$0xff]  ;;  %v1204_v7 = vmax.f32 %v2534_v8, 0.0  ;;  %v1552_v8 = vsel %vm1543_vm1, %v1391_v35, %v1519_v62 }
  0xd7   : > { %v1384_v1 = vmax.f32 %v1327_v12, %v1328_v16  ;;  %v1448_v6 = vrot.slane %v1328_v16, 7  ;;  %v1392_v19 = vmax.f32 %v1341_v13, %v1342_v17  ;;  %v1456_v22 = vrot.slane %v1342_v17, 7  ;;  %v2606_v23 = vpop.f32.mrf.mxu2  ;;  %v2608_v54 = vpop.f32.mrf.mxu3 }
  0xd8   : > { %v1206_v25 = vmax.f32 %v2606_v23, 0.0  ;;  %v1238_v26 = vmax.f32 %v2608_v54, 0.0  ;;  %v2618_v27 = vpop.f32.mrf.mxu0  ;;  %v2620_v28 = vpop.f32.mrf.mxu1  ;;  %v1568_v12 = vsel %vm1543_vm1, %v1407_v36, %v1535_v33 }
  0xd9   : > { %v1512_v38 = vmax.f32 %v1384_v1, %v1448_v6  ;;  %v1520_v41 = vmax.f32 %v1392_v19, %v1456_v22  ;;  %v2091_v6 = vld [vmem:[%s2411_s29 + $0xe8] sm:$0xff] }
  0xda   : > { %v1298_v44 = vmax.f32 %v1204_v7, %v1206_v25  ;;  %v1314_v47 = vmax.f32 %v1236_v24, %v1238_v26  ;;  %v1143_v24 = vmax.f32 %v2618_v27, 0.0 }
  0xdb   : > { %v1545_v51 = vsel %vm1543_vm1, %v1384_v1, %v1512_v38  ;;  %v1553_v58 = vsel %vm1543_vm1, %v1392_v19, %v1520_v41  ;;  %2003 = vmatmul.msk.bf16.gmra.mxu0 %vm613_vm0, %v2074_v55  ;;  %2019 = vmatmul.msk.bf16.gmra.mxu1 %vm613_vm0, %v2090_v4  ;;  %v2075_v1 = vld [vmem:[%s2411_s29 + $0x68] sm:$0xff] }
  0xdc   : > { %v2133_v35 = vpack.c.bf16 %v1545_v51, %v1544_v3  ;;  %v2153_v52 = vpack.c.bf16 %v1553_v58, %v1552_v8  ;;  %v1356_v32 = vmax.f32 %v1298_v44, %v1202_v34  ;;  %v1370_v61 = vmax.f32 %v1314_v47, %v1234_v42  ;;  %2035 = vmatmul.msk.bf16.gmra.mxu2 %vm613_vm0, %v2106_v31  ;;  %v2107_v55 = vld [vmem:[%s2411_s29 + $0x168] sm:$0xff] }
  0xdd   : > { %2051 = vmatmul.msk.bf16.gmra.mxu3 %vm613_vm0, %v2122_v43  ;;  %v1175_v31 = vmax.f32 %v2620_v28, 0.0 }
  0xde   : > { %2134 = vst [vmem:[%s2643_s4] sm:$0xff] %v2133_v35   ;;  %v1400_v62 = vmax.f32 %v1355_v9, %v1356_v32  ;;  %v1464_v63 = vrot.slane %v1356_v32, 7  ;;  %v1408_v2 = vmax.f32 %v1369_v48, %v1370_v61  ;;  %v1472_v56 = vrot.slane %v1370_v61, 7 }
  0xdf   : > { %2213 = vst [vmem:[%s2643_s4 + $0x20] sm:$0xff] %v2153_v52   ;;  %v995_v57 = vpop.f32.mrf.mxu2  ;;  %v1075_v34 = vpop.f32.mrf.mxu3 }
  0xe0   : > { %v1528_v42 = vmax.f32 %v1400_v62, %v1464_v63  ;;  %v1536_v3 = vmax.f32 %v1408_v2, %v1472_v56  ;;  %v837_v5 = vpop.f32.mrf.mxu0  ;;  %v917_v10 = vpop.f32.mrf.mxu1  ;;  %v1207_v53 = vmax.f32 %v995_v57, 0.0  ;;  %v1239_v33 = vmax.f32 %v1075_v34, 0.0 }
  0xe1   : > { %v1144_v38 = vmax.f32 %v837_v5, 0.0  ;;  %v1176_v41 = vmax.f32 %v917_v10, 0.0  ;;  %v2108_v5 = vld [vmem:[%s2411_s29 + $0x170] sm:$0xff] }
  0xe2   : > { %v1561_v13 = vsel %vm1543_vm1, %v1400_v62, %v1528_v42  ;;  %v1569_v16 = vsel %vm1543_vm1, %v1408_v2, %v1536_v3 }
  0xe3   : > { %v2173_v17 = vpack.c.bf16 %v1561_v13, %v1560_v11  ;;  %v2193_v20 = vpack.c.bf16 %v1569_v16, %v1568_v12  ;;  %v2124_v12 = vld [vmem:[%s2411_s29 + $0x1f0] sm:$0xff] }
  0xe5   : > { %2217 = vst [vmem:[%s2643_s4 + $0x40] sm:$0xff] %v2173_v17  }
  0xe6   : > { %2221 = vst [vmem:[%s2643_s4 + $0x60] sm:$0xff] %v2193_v20  }
  0xe7   : > { %v997_v21 = vpop.f32.mrf.mxu2  ;;  %v1077_v0 = vpop.f32.mrf.mxu3 }
  0xe8   : > { %v2655_v19 = vpop.f32.mrf.mxu0  ;;  %v2657_v22 = vpop.f32.mrf.mxu1  ;;  %v1208_v62 = vmax.f32 %v997_v21, 0.0  ;;  %v1240_v63 = vmax.f32 %v1077_v0, 0.0 }
  0xe9   : > { %v1145_v4 = vmax.f32 %v2655_v19, 0.0  ;;  %v1177_v7 = vmax.f32 %v2657_v22, 0.0 }
  0xeb   : > { %2004 = vmatmul.msk.bf16.gmra.mxu0 %vm613_vm0, %v2075_v1  ;;  %2020 = vmatmul.msk.bf16.gmra.mxu1 %vm613_vm0, %v2091_v6  ;;  %v1267_v9 = vmax.f32 %v1143_v24, %v1145_v4  ;;  %v1283_v44 = vmax.f32 %v1175_v31, %v1177_v7 }
  0xec   : > { %2036 = vmatmul.msk.bf16.gmra.mxu2 %vm613_vm0, %v2107_v55 }
  0xed   : > { %2052 = vmatmul.msk.bf16.gmra.mxu3 %vm613_vm0, %v2123_v18  ;;  %v1329_v35 = vmax.f32 %v1267_v9, %v1141_v29  ;;  %v1343_v52 = vmax.f32 %v1283_v44, %v1173_v30  ;;  %v2076_v30 = vld [vmem:[%s2411_s29 + $0x70] sm:$0xff]  ;;  %v2077_v9 = vld [vmem:[%s2411_s29 + $0x78] sm:$0xff] }
  0xee   : > { %v2093_v44 = vld [vmem:[%s2411_s29 + $0xf8] sm:$0xff] }
  0xef   : > { %v2669_v36 = vpop.f32.mrf.mxu2  ;;  %v2671_v37 = vpop.f32.mrf.mxu3 }
  0xf0   : > { %v2673_v43 = vpop.f32.mrf.mxu0  ;;  %v2675_v8 = vpop.f32.mrf.mxu1  ;;  %v1209_v51 = vmax.f32 %v2669_v36, 0.0  ;;  %v1241_v58 = vmax.f32 %v2671_v37, 0.0 }
  0xf1   : > { %v1146_v27 = vmax.f32 %v2673_v43, 0.0  ;;  %v1178_v28 = vmax.f32 %v2675_v8, 0.0 }
  0xf2   : > { %v1299_v46 = vmax.f32 %v1207_v53, %v1209_v51 }
  0xf3   : > { %v1268_v47 = vmax.f32 %v1144_v38, %v1146_v27  ;;  %v1284_v48 = vmax.f32 %v1176_v41, %v1178_v28 }
  0xf4   : > { %v1357_v21 = vmax.f32 %v1299_v46, %v1205_v59 }
  0xf5   : > { %v1330_v32 = vmax.f32 %v1268_v47, %v1142_v49  ;;  %v1344_v61 = vmax.f32 %v1284_v48, %v1174_v50  ;;  %v1315_v49 = vmax.f32 %v1239_v33, %v1241_v58 }
  0xf7   : > { %v1385_v2 = vmax.f32 %v1329_v35, %v1330_v32  ;;  %v1449_v56 = vrot.slane %v1330_v32, 7  ;;  %v1393_v14 = vmax.f32 %v1343_v52, %v1344_v61  ;;  %v1457_v42 = vrot.slane %v1344_v61, 7  ;;  %v2697_v29 = vpop.f32.mrf.mxu2  ;;  %v2699_v15 = vpop.f32.mrf.mxu3  ;;  %v2109_v35 = vld [vmem:[%s2411_s29 + $0x178] sm:$0xff] }
  0xf8   : > { %v1210_v50 = vmax.f32 %v2697_v29, 0.0  ;;  %v1242_v57 = vmax.f32 %v2699_v15, 0.0  ;;  %v845_v34 = vpop.f32.mrf.mxu0  ;;  %v925_v3 = vpop.f32.mrf.mxu1  ;;  %v1371_v0 = vmax.f32 %v1315_v49, %v1237_v60  ;;  %v2125_v52 = vld [vmem:[%s2411_s29 + $0x1f8] sm:$0xff] }
  0xf9   : > { %v1513_v10 = vmax.f32 %v1385_v2, %v1449_v56  ;;  %v1521_v11 = vmax.f32 %v1393_v14, %v1457_v42  ;;  %v1147_v53 = vmax.f32 %v845_v34, 0.0  ;;  %v1179_v33 = vmax.f32 %v925_v3, 0.0 }
  0xfa   : > { %v1300_v13 = vmax.f32 %v1208_v62, %v1210_v50  ;;  %v1316_v16 = vmax.f32 %v1240_v63, %v1242_v57 }
  0xfb   : > { %v2716_v17 = vsel %vm1543_vm1, %v1385_v2, %v1513_v10  ;;  %v2719_v20 = vsel %vm1543_vm1, %v1393_v14, %v1521_v11  ;;  %2005 = vmatmul.msk.bf16.gmra.mxu0 %vm613_vm0, %v2076_v30  ;;  %2021 = vmatmul.msk.bf16.gmra.mxu1 %vm613_vm0, %v2092_v45 }
  0xfc   : > { %v1358_v1 = vmax.f32 %v1300_v13, %v1206_v25  ;;  %v1372_v6 = vmax.f32 %v1316_v16, %v1238_v26  ;;  %2037 = vmatmul.msk.bf16.gmra.mxu2 %vm613_vm0, %v2108_v5 }
  0xfd   : > { %2053 = vmatmul.msk.bf16.gmra.mxu3 %vm613_vm0, %v2124_v12 }
  0xfe   : > { %v1401_v55 = vmax.f32 %v1357_v21, %v1358_v1  ;;  %v1465_v18 = vrot.slane %v1358_v1, 7  ;;  %v1409_v24 = vmax.f32 %v1371_v0, %v1372_v6  ;;  %v1473_v39 = vrot.slane %v1372_v6, 7 }
  0xff   : > { %v1005_v40 = vpop.f32.mrf.mxu2  ;;  %v1085_v59 = vpop.f32.mrf.mxu3 }
 0x100   : > { %v1529_v60 = vmax.f32 %v1401_v55, %v1465_v18  ;;  %v1537_v23 = vmax.f32 %v1409_v24, %v1473_v39  ;;  %v847_v25 = vpop.f32.mrf.mxu0  ;;  %v927_v31 = vpop.f32.mrf.mxu1  ;;  %v1211_v11 = vmax.f32 %v1005_v40, 0.0  ;;  %v1243_v12 = vmax.f32 %v1085_v59, 0.0 }
 0x101   : > { %v1148_v2 = vmax.f32 %v847_v25, 0.0  ;;  %v1180_v56 = vmax.f32 %v927_v31, 0.0 }
 0x102   : > { %v2734_v54 = vsel %vm1543_vm1, %v1401_v55, %v1529_v60  ;;  %v2737_v26 = vsel %vm1543_vm1, %v1409_v24, %v1537_v23 }
 0x107   : > { %v1007_v38 = vpop.f32.mrf.mxu2  ;;  %v1087_v41 = vpop.f32.mrf.mxu3 }
 0x108   : > { %v2741_v47 = vpop.f32.mrf.mxu0  ;;  %v2743_v48 = vpop.f32.mrf.mxu1  ;;  %v1244_v43 = vmax.f32 %v1087_v41, 0.0 }
 0x109   : > { %v1149_v32 = vmax.f32 %v2741_v47, 0.0  ;;  %v1181_v61 = vmax.f32 %v2743_v48, 0.0 }
 0x10b   : > { %2006 = vmatmul.msk.bf16.gmra.mxu0 %vm613_vm0, %v2077_v9  ;;  %2022 = vmatmul.msk.bf16.gmra.mxu1 %vm613_vm0, %v2093_v44  ;;  %v1269_v30 = vmax.f32 %v1147_v53, %v1149_v32  ;;  %v1285_v45 = vmax.f32 %v1179_v33, %v1181_v61 }
 0x10c   : > { %2038 = vmatmul.msk.bf16.gmra.mxu2 %vm613_vm0, %v2109_v35 }
 0x10d   : > { %2054 = vmatmul.msk.bf16.gmra.mxu3 %vm613_vm0, %v2125_v52  ;;  %v1331_v13 = vmax.f32 %v1269_v30, %v1145_v4  ;;  %v1345_v16 = vmax.f32 %v1285_v45, %v1177_v7  ;;  %v1212_v7 = vmax.f32 %v1007_v38, 0.0 }
 0x10f   : > { %v2753_v62 = vpop.f32.mrf.mxu2  ;;  %v2755_v63 = vpop.f32.mrf.mxu3 }
 0x110   : > { %v2757_v14 = vpop.f32.mrf.mxu0  ;;  %v2759_v42 = vpop.f32.mrf.mxu1  ;;  %v1213_v34 = vmax.f32 %v2753_v62, 0.0  ;;  %v1245_v3 = vmax.f32 %v2755_v63, 0.0 }
 0x111   : > { %v1150_v46 = vmax.f32 %v2757_v14, 0.0  ;;  %v1182_v49 = vmax.f32 %v2759_v42, 0.0 }
 0x112   : > { %v1301_v1 = vmax.f32 %v1211_v11, %v1213_v34  ;;  %v1317_v6 = vmax.f32 %v1243_v12, %v1245_v3 }
 0x113   : > { %v1270_v5 = vmax.f32 %v1148_v2, %v1150_v46  ;;  %v1286_v10 = vmax.f32 %v1180_v56, %v1182_v49 }
 0x114   : > { %v1359_v25 = vmax.f32 %v1301_v1, %v1209_v51  ;;  %v1373_v31 = vmax.f32 %v1317_v6, %v1241_v58 }
 0x115   : > { %v1332_v21 = vmax.f32 %v1270_v5, %v1146_v27  ;;  %v1346_v0 = vmax.f32 %v1286_v10, %v1178_v28 }
 0x117   : > { %v1386_v55 = vmax.f32 %v1331_v13, %v1332_v21  ;;  %v1450_v18 = vrot.slane %v1332_v21, 7  ;;  %v1394_v24 = vmax.f32 %v1345_v16, %v1346_v0  ;;  %v1458_v19 = vrot.slane %v1346_v0, 7  ;;  %v2785_v4 = vpop.f32.mrf.mxu2  ;;  %v2787_v22 = vpop.f32.mrf.mxu3 }
 0x118   : > { %v1214_v27 = vmax.f32 %v2785_v4, 0.0  ;;  %v1246_v8 = vmax.f32 %v2787_v22, 0.0  ;;  %v855_v28 = vpop.f32.mrf.mxu0  ;;  %v935_v39 = vpop.f32.mrf.mxu1 }
 0x119   : > { %v1514_v40 = vmax.f32 %v1386_v55, %v1450_v18  ;;  %v1522_v59 = vmax.f32 %v1394_v24, %v1458_v19  ;;  %v1151_v13 = vmax.f32 %v855_v28, 0.0  ;;  %v1183_v16 = vmax.f32 %v935_v39, 0.0 }
 0x11a   : > { %v1302_v60 = vmax.f32 %v1212_v7, %v1214_v27  ;;  %v1318_v23 = vmax.f32 %v1244_v43, %v1246_v8 }
 0x11b   : > { %v1547_v38 = vsel %vm1543_vm1, %v1386_v55, %v1514_v40  ;;  %v1555_v41 = vsel %vm1543_vm1, %v1394_v24, %v1522_v59 }
 0x11c   : > { %v2138_v9 = vpack.c.bf16 %v1547_v38, %v2716_v17  ;;  %v2158_v44 = vpack.c.bf16 %v1555_v41, %v2719_v20  ;;  %v1360_v35 = vmax.f32 %v1302_v60, %v1210_v50  ;;  %v1374_v52 = vmax.f32 %v1318_v23, %v1242_v57 }
 0x11e   : > { %2210 = vst [vmem:[%s2643_s4 + $0x8] sm:$0xff] %v2138_v9   ;;  %v1402_v36 = vmax.f32 %v1359_v25, %v1360_v35  ;;  %v1466_v37 = vrot.slane %v1360_v35, 7  ;;  %v1410_v51 = vmax.f32 %v1373_v31, %v1374_v52  ;;  %v1474_v58 = vrot.slane %v1374_v52, 7 }
 0x11f   : > { %2214 = vst [vmem:[%s2643_s4 + $0x28] sm:$0xff] %v2158_v44   ;;  %v1015_v53 = vpop.f32.mrf.mxu2  ;;  %v1095_v33 = vpop.f32.mrf.mxu3 }
 0x120   : > { %v1530_v2 = vmax.f32 %v1402_v36, %v1466_v37  ;;  %v1538_v17 = vmax.f32 %v1410_v51, %v1474_v58  ;;  %v857_v56 = vpop.f32.mrf.mxu0  ;;  %v937_v20 = vpop.f32.mrf.mxu1  ;;  %v1215_v25 = vmax.f32 %v1015_v53, 0.0  ;;  %v1247_v31 = vmax.f32 %v1095_v33, 0.0 }
 0x122   : > { %v1563_v29 = vsel %vm1543_vm1, %v1402_v36, %v1530_v2  ;;  %v1571_v50 = vsel %vm1543_vm1, %v1410_v51, %v1538_v17 }
 0x123   : > { %v2178_v15 = vpack.c.bf16 %v1563_v29, %v2734_v54  ;;  %v2198_v57 = vpack.c.bf16 %v1571_v50, %v2737_v26  ;;  %v1152_v54 = vmax.f32 %v857_v56, 0.0  ;;  %v1184_v26 = vmax.f32 %v937_v20, 0.0 }
 0x125   : > { %2218 = vst [vmem:[%s2643_s4 + $0x48] sm:$0xff] %v2178_v15  }
 0x126   : > { %2222 = vst [vmem:[%s2643_s4 + $0x68] sm:$0xff] %v2198_v57  }
 0x127   : > { %v1017_v30 = vpop.f32.mrf.mxu2  ;;  %v1097_v45 = vpop.f32.mrf.mxu3 }
 0x128   : > { %v2815_v5 = vpop.f32.mrf.mxu0  ;;  %v2817_v10 = vpop.f32.mrf.mxu1  ;;  %v1216_v38 = vmax.f32 %v1017_v30, 0.0  ;;  %v1248_v41 = vmax.f32 %v1097_v45, 0.0 }
 0x129   : > { %v1153_v11 = vmax.f32 %v2815_v5, 0.0  ;;  %v1185_v12 = vmax.f32 %v2817_v10, 0.0 }
 0x12b   : > { %v1271_v55 = vmax.f32 %v1151_v13, %v1153_v11  ;;  %v1287_v18 = vmax.f32 %v1183_v16, %v1185_v12 }
 0x12d   : > { %v1333_v40 = vmax.f32 %v1271_v55, %v1149_v32  ;;  %v1347_v59 = vmax.f32 %v1287_v18, %v1181_v61 }
 0x12f   : > { %v2821_v21 = vpop.f32.mrf.mxu2  ;;  %v2823_v0 = vpop.f32.mrf.mxu3 }
 0x130   : > { %v2825_v1 = vpop.f32.mrf.mxu0  ;;  %v2827_v6 = vpop.f32.mrf.mxu1  ;;  %v1217_v28 = vmax.f32 %v2821_v21, 0.0  ;;  %v1249_v39 = vmax.f32 %v2823_v0, 0.0 }
 0x131   : > { %v1154_v24 = vmax.f32 %v2825_v1, 0.0  ;;  %v1186_v19 = vmax.f32 %v2827_v6, 0.0 }
 0x132   : > { %v1303_v48 = vmax.f32 %v1215_v25, %v1217_v28  ;;  %v1319_v32 = vmax.f32 %v1247_v31, %v1249_v39 }
 0x133   : > { %v1272_v7 = vmax.f32 %v1152_v54, %v1154_v24  ;;  %v1288_v43 = vmax.f32 %v1184_v26, %v1186_v19 }
 0x134   : > { %v1361_v2 = vmax.f32 %v1303_v48, %v1213_v34  ;;  %v1375_v17 = vmax.f32 %v1319_v32, %v1245_v3 }
 0x135   : > { %v1334_v60 = vmax.f32 %v1272_v7, %v1150_v46  ;;  %v1348_v23 = vmax.f32 %v1288_v43, %v1182_v49 }
 0x137   : > { %v1387_v9 = vmax.f32 %v1333_v40, %v1334_v60  ;;  %v1451_v44 = vrot.slane %v1334_v60, 7  ;;  %v1395_v35 = vmax.f32 %v1347_v59, %v1348_v23  ;;  %v1459_v52 = vrot.slane %v1348_v23, 7  ;;  %v2849_v36 = vpop.f32.mrf.mxu2  ;;  %v2851_v47 = vpop.f32.mrf.mxu3 }
 0x138   : > { %v1218_v61 = vmax.f32 %v2849_v36, 0.0  ;;  %v1250_v14 = vmax.f32 %v2851_v47, 0.0  ;;  %v865_v42 = vpop.f32.mrf.mxu0  ;;  %v945_v46 = vpop.f32.mrf.mxu1 }
 0x139   : > { %v1515_v49 = vmax.f32 %v1387_v9, %v1451_v44  ;;  %v1523_v37 = vmax.f32 %v1395_v35, %v1459_v52  ;;  %v1155_v55 = vmax.f32 %v865_v42, 0.0  ;;  %v1187_v18 = vmax.f32 %v945_v46, 0.0 }
 0x13a   : > { %v1304_v51 = vmax.f32 %v1216_v38, %v1218_v61  ;;  %v1320_v58 = vmax.f32 %v1248_v41, %v1250_v14 }
 0x13b   : > { %v2864_v53 = vsel %vm1543_vm1, %v1387_v9, %v1515_v49  ;;  %v2867_v33 = vsel %vm1543_vm1, %v1395_v35, %v1523_v37 }
 0x13c   : > { %v1362_v56 = vmax.f32 %v1304_v51, %v1214_v27  ;;  %v1376_v20 = vmax.f32 %v1320_v58, %v1246_v8 }
 0x13e   : > { %v1403_v29 = vmax.f32 %v1361_v2, %v1362_v56  ;;  %v1467_v50 = vrot.slane %v1362_v56, 7  ;;  %v1411_v15 = vmax.f32 %v1375_v17, %v1376_v20  ;;  %v1475_v57 = vrot.slane %v1376_v20, 7 }
 0x13f   : > { %v1025_v30 = vpop.f32.mrf.mxu2  ;;  %v1105_v45 = vpop.f32.mrf.mxu3 }
 0x140   : > { %v1531_v13 = vmax.f32 %v1403_v29, %v1467_v50  ;;  %v1539_v16 = vmax.f32 %v1411_v15, %v1475_v57  ;;  %v867_v54 = vpop.f32.mrf.mxu0  ;;  %v947_v62 = vpop.f32.mrf.mxu1  ;;  %v1219_v48 = vmax.f32 %v1025_v30, 0.0  ;;  %v1251_v32 = vmax.f32 %v1105_v45, 0.0 }
 0x141   : > { %v1156_v40 = vmax.f32 %v867_v54, 0.0  ;;  %v1188_v59 = vmax.f32 %v947_v62, 0.0 }
 0x142   : > { %v2878_v34 = vsel %vm1543_vm1, %v1403_v29, %v1531_v13  ;;  %v2881_v63 = vsel %vm1543_vm1, %v1411_v15, %v1539_v16 }
 0x147   : > { %v1027_v3 = vpop.f32.mrf.mxu2  ;;  %v1107_v4 = vpop.f32.mrf.mxu3 }
 0x148   : > { %v2883_v22 = vpop.f32.mrf.mxu0  ;;  %v2885_v27 = vpop.f32.mrf.mxu1  ;;  %v1252_v1 = vmax.f32 %v1107_v4, 0.0 }
 0x149   : > { %v1157_v8 = vmax.f32 %v2883_v22, 0.0  ;;  %v1189_v26 = vmax.f32 %v2885_v27, 0.0 }
 0x14b   : > { %v1273_v25 = vmax.f32 %v1155_v55, %v1157_v8  ;;  %v1289_v31 = vmax.f32 %v1187_v18, %v1189_v26 }
 0x14d   : > { %v1335_v42 = vmax.f32 %v1273_v25, %v1153_v11  ;;  %v1349_v46 = vmax.f32 %v1289_v31, %v1185_v12  ;;  %v1220_v12 = vmax.f32 %v1027_v3, 0.0 }
 0x14f   : > { %v2889_v7 = vpop.f32.mrf.mxu2  ;;  %v2891_v43 = vpop.f32.mrf.mxu3 }
 0x150   : > { %v2893_v60 = vpop.f32.mrf.mxu0  ;;  %v2895_v23 = vpop.f32.mrf.mxu1  ;;  %v1221_v9 = vmax.f32 %v2889_v7, 0.0  ;;  %v1253_v44 = vmax.f32 %v2891_v43, 0.0 }
 0x151   : > { %v1158_v38 = vmax.f32 %v2893_v60, 0.0  ;;  %v1190_v41 = vmax.f32 %v2895_v23, 0.0 }
 0x152   : > { %v1305_v51 = vmax.f32 %v1219_v48, %v1221_v9  ;;  %v1321_v58 = vmax.f32 %v1251_v32, %v1253_v44 }
 0x153   : > { %v1274_v35 = vmax.f32 %v1156_v40, %v1158_v38  ;;  %v1290_v52 = vmax.f32 %v1188_v59, %v1190_v41 }
 0x154   : > { %v1363_v30 = vmax.f32 %v1305_v51, %v1217_v28  ;;  %v1377_v45 = vmax.f32 %v1321_v58, %v1249_v39 }
 0x155   : > { %v1336_v49 = vmax.f32 %v1274_v35, %v1154_v24  ;;  %v1350_v37 = vmax.f32 %v1290_v52, %v1186_v19 }
 0x157   : > { %v1388_v2 = vmax.f32 %v1335_v42, %v1336_v49  ;;  %v1452_v17 = vrot.slane %v1336_v49, 7  ;;  %v1396_v56 = vmax.f32 %v1349_v46, %v1350_v37  ;;  %v1460_v5 = vrot.slane %v1350_v37, 7  ;;  %v2921_v11 = vpop.f32.mrf.mxu2  ;;  %v2923_v10 = vpop.f32.mrf.mxu3 }
 0x158   : > { %v1222_v24 = vmax.f32 %v2921_v11, 0.0  ;;  %v1254_v6 = vmax.f32 %v2923_v10, 0.0  ;;  %v875_v19 = vpop.f32.mrf.mxu0  ;;  %v955_v20 = vpop.f32.mrf.mxu1 }
 0x159   : > { %v1516_v29 = vmax.f32 %v1388_v2, %v1452_v17  ;;  %v1524_v50 = vmax.f32 %v1396_v56, %v1460_v5  ;;  %v1159_v42 = vmax.f32 %v875_v19, 0.0  ;;  %v1191_v49 = vmax.f32 %v955_v20, 0.0 }
 0x15a   : > { %v1306_v15 = vmax.f32 %v1220_v12, %v1222_v24  ;;  %v1322_v57 = vmax.f32 %v1252_v1, %v1254_v6 }
 0x15b   : > { %v1549_v13 = vsel %vm1543_vm1, %v1388_v2, %v1516_v29  ;;  %v1557_v16 = vsel %vm1543_vm1, %v1396_v56, %v1524_v50 }
 0x15c   : > { %v2143_v54 = vpack.c.bf16 %v1549_v13, %v2864_v53  ;;  %v2163_v62 = vpack.c.bf16 %v1557_v16, %v2867_v33  ;;  %v1364_v3 = vmax.f32 %v1306_v15, %v1218_v61  ;;  %v1378_v4 = vmax.f32 %v1322_v57, %v1250_v14 }
 0x15e   : > { %2211 = vst [vmem:[%s2643_s4 + $0x10] sm:$0xff] %v2143_v54   ;;  %v1404_v21 = vmax.f32 %v1363_v30, %v1364_v3  ;;  %v1468_v0 = vrot.slane %v1364_v3, 7  ;;  %v1412_v28 = vmax.f32 %v1377_v45, %v1378_v4  ;;  %v1476_v39 = vrot.slane %v1378_v4, 7 }
 0x15f   : > { %2215 = vst [vmem:[%s2643_s4 + $0x30] sm:$0xff] %v2163_v62   ;;  %v1035_v55 = vpop.f32.mrf.mxu2 }
 0x160   : > { %v1532_v18 = vmax.f32 %v1404_v21, %v1468_v0  ;;  %v1540_v40 = vmax.f32 %v1412_v28, %v1476_v39  ;;  %v1115_v53 = vpop.f32.mrf.mxu3  ;;  %v877_v59 = vpop.f32.mrf.mxu0  ;;  %v1223_v15 = vmax.f32 %v1035_v55, 0.0 }
 0x161   : > { %v957_v33 = vpop.f32.mrf.mxu1  ;;  %v1255_v45 = vmax.f32 %v1115_v53, 0.0 }
 0x162   : > { %v1565_v36 = vsel %vm1543_vm1, %v1404_v21, %v1532_v18  ;;  %v1573_v61 = vsel %vm1543_vm1, %v1412_v28, %v1540_v40  ;;  %v1192_v17 = vmax.f32 %v957_v33, 0.0 }
 0x163   : > { %v2183_v47 = vpack.c.bf16 %v1565_v36, %v2878_v34  ;;  %v2203_v14 = vpack.c.bf16 %v1573_v61, %v2881_v63  ;;  %v1160_v63 = vmax.f32 %v877_v59, 0.0 }
 0x165   : > { %2219 = vst [vmem:[%s2643_s4 + $0x50] sm:$0xff] %v2183_v47  }
 0x166   : > { %2223 = vst [vmem:[%s2643_s4 + $0x70] sm:$0xff] %v2203_v14  }
 0x167   : > { %v1037_v25 = vpop.f32.mrf.mxu2 }
 0x168   : > { %v1117_v31 = vpop.f32.mrf.mxu3  ;;  %v2951_v35 = vpop.f32.mrf.mxu0  ;;  %v1224_v13 = vmax.f32 %v1037_v25, 0.0 }
 0x169   : > { %v2953_v52 = vpop.f32.mrf.mxu1  ;;  %v1161_v48 = vmax.f32 %v2951_v35, 0.0 }
 0x16a   : > { %v1193_v32 = vmax.f32 %v2953_v52, 0.0 }
 0x16b   : > { %v1275_v51 = vmax.f32 %v1159_v42, %v1161_v48 }
 0x16c   : > { %v1291_v56 = vmax.f32 %v1191_v49, %v1193_v32 }
 0x16d   : > { %v1337_v20 = vmax.f32 %v1275_v51, %v1157_v8 }
 0x16e   : > { %v1351_v57 = vmax.f32 %v1291_v56, %v1189_v26  ;;  %v1256_v26 = vmax.f32 %v1117_v31, 0.0 }
 0x16f   : > { %v2957_v46 = vpop.f32.mrf.mxu2 }
 0x170   : > { %v2959_v37 = vpop.f32.mrf.mxu3  ;;  %v2961_v34 = vpop.f32.mrf.mxu0  ;;  %v1225_v1 = vmax.f32 %v2957_v46, 0.0 }
 0x171   : > { %v1162_v58 = vmax.f32 %v2961_v34, 0.0  ;;  %v2966_v2 = vpop.f32.mrf.mxu1  ;;  %v1257_v29 = vmax.f32 %v2959_v37, 0.0 }
 0x172   : > { %v1194_v5 = vmax.f32 %v2966_v2, 0.0  ;;  %v1307_v22 = vmax.f32 %v1223_v15, %v1225_v1 }
 0x173   : > { %v1276_v12 = vmax.f32 %v1160_v63, %v1162_v58  ;;  %v1323_v23 = vmax.f32 %v1255_v45, %v1257_v29 }
 0x174   : > { %v1292_v19 = vmax.f32 %v1192_v17, %v1194_v5  ;;  %v1365_v18 = vmax.f32 %v1307_v22, %v1221_v9 }
 0x175   : > { %v1338_v50 = vmax.f32 %v1276_v12, %v1158_v38  ;;  %v1379_v59 = vmax.f32 %v1323_v23, %v1253_v44 }
 0x176   : > { %v1352_v30 = vmax.f32 %v1292_v19, %v1190_v41 }
 0x177   : > { %v1389_v16 = vmax.f32 %v1337_v20, %v1338_v50  ;;  %v1453_v54 = vrot.slane %v1338_v50, 7  ;;  %v2985_v62 = vpop.f32.mrf.mxu2 }
 0x178   : > { %v1397_v8 = vmax.f32 %v1351_v57, %v1352_v30  ;;  %v1461_v3 = vrot.slane %v1352_v30, 7  ;;  %v1226_v60 = vmax.f32 %v2985_v62, 0.0  ;;  %v2990_v38 = vpop.f32.mrf.mxu3  ;;  %v885_v27 = vpop.f32.mrf.mxu0 }
 0x179   : > { %v1517_v41 = vmax.f32 %v1389_v16, %v1453_v54  ;;  %v1258_v4 = vmax.f32 %v2990_v38, 0.0  ;;  %v965_v21 = vpop.f32.mrf.mxu1  ;;  %v1163_v17 = vmax.f32 %v885_v27, 0.0 }
 0x17a   : > { %v1525_v0 = vmax.f32 %v1397_v8, %v1461_v3  ;;  %v1308_v28 = vmax.f32 %v1224_v13, %v1226_v60  ;;  %v1195_v12 = vmax.f32 %v965_v21, 0.0 }
 0x17b   : > { %v2998_v39 = vsel %vm1543_vm1, %v1389_v16, %v1517_v41  ;;  %v1324_v55 = vmax.f32 %v1256_v26, %v1258_v4 }
 0x17c   : > { %v3005_v40 = vsel %vm1543_vm1, %v1397_v8, %v1525_v0  ;;  %v1366_v53 = vmax.f32 %v1308_v28, %v1222_v24 }
 0x17d   : > { %v1380_v33 = vmax.f32 %v1324_v55, %v1254_v6 }
 0x17e   : > { %v1405_v36 = vmax.f32 %v1365_v18, %v1366_v53  ;;  %v1469_v61 = vrot.slane %v1366_v53, 7 }
 0x17f   : > { %v1413_v47 = vmax.f32 %v1379_v59, %v1380_v33  ;;  %v1477_v14 = vrot.slane %v1380_v33, 7  ;;  %v1045_v25 = vpop.f32.mrf.mxu2 }
 0x180   : > { %v1533_v31 = vmax.f32 %v1405_v36, %v1469_v61  ;;  %v1125_v7 = vpop.f32.mrf.mxu3  ;;  %v887_v9 = vpop.f32.mrf.mxu0  ;;  %v1227_v23 = vmax.f32 %v1045_v25, 0.0 }
 0x181   : > { %v1541_v42 = vmax.f32 %v1413_v47, %v1477_v14  ;;  %v967_v49 = vpop.f32.mrf.mxu1  ;;  %v1164_v50 = vmax.f32 %v887_v9, 0.0  ;;  %v1259_v0 = vmax.f32 %v1125_v7, 0.0 }
 0x182   : > { %v3014_v63 = vsel %vm1543_vm1, %v1405_v36, %v1533_v31  ;;  %v1196_v45 = vmax.f32 %v967_v49, 0.0 }
 0x183   : > { %v3017_v11 = vsel %vm1543_vm1, %v1413_v47, %v1541_v42 }
 0x187   : > { %v1047_v43 = vpop.f32.mrf.mxu2 }
 0x188   : > { %v1127_v44 = vpop.f32.mrf.mxu3  ;;  %v890_v10 = vpop.f32.mrf.mxu0  ;;  %v1228_v28 = vmax.f32 %v1047_v43, 0.0 }
 0x189   : > { %v970_v24 = vpop.f32.mrf.mxu1  ;;  %v1165_v6 = vmax.f32 %v890_v10, 0.0  ;;  %v1260_v34 = vmax.f32 %v1127_v44, 0.0 }
 0x18a   : > { %v1197_v51 = vmax.f32 %v970_v24, 0.0 }
 0x18b   : > { %v1277_v15 = vmax.f32 %v1163_v17, %v1165_v6 }
 0x18c   : > { %v1293_v13 = vmax.f32 %v1195_v12, %v1197_v51 }
 0x18d   : > { %v1339_v3 = vmax.f32 %v1277_v15, %v1161_v48 }
 0x18e   : > { %v1353_v41 = vmax.f32 %v1293_v13, %v1193_v32 }
 0x18f   : > { %v1050_v56 = vpop.f32.mrf.mxu2 }
 0x190   : > { %v1130_v19 = vpop.f32.mrf.mxu3  ;;  %v892_v20 = vpop.f32.mrf.mxu0  ;;  %v1229_v22 = vmax.f32 %v1050_v56, 0.0 }
 0x191   : > { %v1166_v57 = vmax.f32 %v892_v20, 0.0  ;;  %v972_v30 = vpop.f32.mrf.mxu1  ;;  %v1261_v26 = vmax.f32 %v1130_v19, 0.0 }
 0x192   : > { %v1198_v16 = vmax.f32 %v972_v30, 0.0  ;;  %v1309_v59 = vmax.f32 %v1227_v23, %v1229_v22 }
 0x193   : > { %v1278_v54 = vmax.f32 %v1164_v50, %v1166_v57 }
 0x194   : > { %v1294_v8 = vmax.f32 %v1196_v45, %v1198_v16  ;;  %v1367_v14 = vmax.f32 %v1309_v59, %v1225_v1 }
 0x195   : > { %v1340_v27 = vmax.f32 %v1278_v54, %v1162_v58  ;;  %v1325_v58 = vmax.f32 %v1259_v0, %v1261_v26 }
 0x196   : > { %v1354_v21 = vmax.f32 %v1294_v8, %v1194_v5 }
 0x197   : > { %v1390_v55 = vmax.f32 %v1339_v3, %v1340_v27  ;;  %v1454_v18 = vrot.slane %v1340_v27, 7  ;;  %v1052_v53 = vpop.f32.mrf.mxu2  ;;  %v1381_v9 = vmax.f32 %v1325_v58, %v1257_v29 }
 0x198   : > { %v1398_v35 = vmax.f32 %v1353_v41, %v1354_v21  ;;  %v1462_v48 = vrot.slane %v1354_v21, 7  ;;  %v1230_v33 = vmax.f32 %v1052_v53, 0.0  ;;  %v1132_v36 = vpop.f32.mrf.mxu3 }
 0x199   : > { %v1518_v61 = vmax.f32 %v1390_v55, %v1454_v18  ;;  %v1262_v52 = vmax.f32 %v1132_v36, 0.0 }
 0x19a   : > { %v1526_v32 = vmax.f32 %v1398_v35, %v1462_v48  ;;  %v1310_v2 = vmax.f32 %v1228_v28, %v1230_v33 }
 0x19b   : > { %v1551_v5 = vsel %vm1543_vm1, %v1390_v55, %v1518_v61  ;;  %v1326_v47 = vmax.f32 %v1260_v34, %v1262_v52 }
 0x19c   : > { %v2148_v25 = vpack.c.bf16 %v1551_v5, %v2998_v39  ;;  %v1559_v31 = vsel %vm1543_vm1, %v1398_v35, %v1526_v32  ;;  %v1368_v7 = vmax.f32 %v1310_v2, %v1226_v60 }
 0x19d   : > { %v2168_v42 = vpack.c.bf16 %v1559_v31, %v3005_v40  ;;  %v1382_v49 = vmax.f32 %v1326_v47, %v1258_v4 }
 0x19e   : > { %2212 = vst [vmem:[%s2643_s4 + $0x18] sm:$0xff] %v2148_v25   ;;  %v1406_v46 = vmax.f32 %v1367_v14, %v1368_v7  ;;  %v1470_v1 = vrot.slane %v1368_v7, 7 }
 0x19f   : > { %2216 = vst [vmem:[%s2643_s4 + $0x38] sm:$0xff] %v2168_v42   ;;  %v1414_v62 = vmax.f32 %v1381_v9, %v1382_v49  ;;  %v1478_v60 = vrot.slane %v1382_v49, 7 }
 0x1a0   : > { %v1534_v37 = vmax.f32 %v1406_v46, %v1470_v1 }
 0x1a1   : > { %v1542_v29 = vmax.f32 %v1414_v62, %v1478_v60 }
 0x1a2   : > { %v1567_v38 = vsel %vm1543_vm1, %v1406_v46, %v1534_v37 }
 0x1a3   : > { %v2188_v4 = vpack.c.bf16 %v1567_v38, %v3014_v63  ;;  %v1575_v39 = vsel %vm1543_vm1, %v1414_v62, %v1542_v29 }
 0x1a4   : > { %v2208_v40 = vpack.c.bf16 %v1575_v39, %v3017_v11 }
 0x1a5   : > { %2220 = vst [vmem:[%s2643_s4 + $0x58] sm:$0xff] %v2188_v4  }
 0x1a6   : > { %2224 = vst [vmem:[%s2643_s4 + $0x78] sm:$0xff] %v2208_v40  }
 0x1a7   : > { %2299 = shalt.err (!%p2296_p3)
}
 0x1a8   : > { %s2336_s27 = smov 64   ;;  %s2337_s28 = smov 4  }
 0x1a9   : > { %2231 = dma.vmem_to_hbm [thread:$0]  (%p2391_p5), %s1655_s13, 2048, %s1657_s14, %s1641_s16, %s2336_s27, %s2336_s27, %s2337_s28  }
 0x1aa PF: > { %p2237_p4 = scmp.ge.s32.totalorder %s2334_s12, 2  ;;  %s1671_s29 = sand.u32 1, %s2322_s9  }
 0x1ab   : > { %s1672_s30 = scalar_lea.sflag [#allocation3], %s1671_s29 }
 0x1ac   : > { %p2234_p7 = pnand %p2237_p4, %p2395_p6 }
 0x1ae   : > { %p2235_p8 = pneg %p2234_p7 }
 0x1b0   : > { %2317 = dma.done.wait (%p2235_p8), %s1672_s30, 2048  }
 0x1b1   : > { %2319 = vsyncadd (%p2235_p8), %s1672_s30, 4294965248  ;;  %p12_p9 = scmp.ge.s32.totalorder %s2378_s15, 10   ;;  %s3086_s9 = smov %s2326_s10 }
 0x1b2   : > { %s3087_s10 = smov %s2330_s11  ;;  %s3088_s11 = smov %s2389_s18 }
 0x1b3   : > { %s3089_s12 = smov %s2378_s15  ;;  %14 = sbr.rel (!%p12_p9) target bundleno = 3 (0x3), region = 63 }
 0x1b8   :  { %1678 = vsyncpa [#allocation3], 1 }
 0x1b9   :  { %1680 = vsyncpa [#allocation3 + $0x1], 1 }

</bundles_post_ra>
